<compile_context>
chip_gen: v6e
topology: v6e:2x2x1
jax: 0.10.0
libtpu: 0.0.40
codegen_flags: <defaults>
</compile_context>

<pallas_src>
import jax
import jax.numpy as jnp
from jax.experimental import pallas as pl
from jax.experimental.pallas import tpu as pltpu

IN_FEATURES = 28 * 28          # 784
HIDDEN = 128
OUT_FEATURES = 10
MAX_TB = 1024                  # batch-tile cap (VMEM-safe on v5e/v6e/v7x)
MIN_SPLIT_B = 256              # force >=2 grid steps above this (v7x dual-TC)


def _round_up(n, m):
    return ((n + m - 1) // m) * m


def _mlp_kernel(x_ref, w1_ref, b1_ref, w2_ref, b2_ref, o_ref):
    # x:  (TB, 784) f32      w1: (784, 128) bf16   b1: (1, 128) f32
    # w2: (128, 10) bf16     b2: (1, 10)   f32     o:  (TB, 10) f32
    xb = x_ref[...].astype(w1_ref.dtype)                       # cast on VPU (free slack)
    h = jnp.dot(xb, w1_ref[...], preferred_element_type=jnp.float32)
    h = jnp.maximum(h + b1_ref[...], 0.0)                      # bias+ReLU in f32
    out = jnp.dot(h.astype(w2_ref.dtype), w2_ref[...],
                  preferred_element_type=jnp.float32)
    o_ref[...] = (out + b2_ref[...]).astype(o_ref.dtype)


def fashion_mlp_forward(x, w1, b1, w2, b2, *, max_tb=MAX_TB,
                        compute_dtype=jnp.bfloat16):
    """x: (B, 1, 28, 28) NCHW (or (B, 28, 28) / (B, 784)). Returns f32 logits (B, 10)."""
    B = x.shape[0]
    x2d = x.reshape(B, IN_FEATURES)                            # nn.Flatten() (free reshape)

    # --- batch tile: pad B only to a sublane multiple (16), right-size tb ----
    b_pad = _round_up(B, 16)
    n_steps = pl.cdiv(b_pad, max_tb)
    if b_pad >= MIN_SPLIT_B:
        n_steps = max(n_steps, 2)                              # keep both v7x TCs busy
    tb = _round_up(pl.cdiv(b_pad, n_steps), 16)
    b_pad = tb * n_steps
    if b_pad != B:
        x2d = jnp.pad(x2d, ((0, b_pad - B), (0, 0)))

    # --- weights: bf16 operands (tiny, resident), f32 biases -----------------
    w1c = w1.astype(compute_dtype)                             # (784, 128)
    w2c = w2.astype(compute_dtype)                             # (128, 10)
    b1r = b1.reshape(1, HIDDEN).astype(jnp.float32)
    b2r = b2.reshape(1, OUT_FEATURES).astype(jnp.float32)

    x_itm = jnp.dtype(x2d.dtype).itemsize
    w_itm = jnp.dtype(compute_dtype).itemsize
    cost = pl.CostEstimate(
        flops=2 * b_pad * (IN_FEATURES * HIDDEN + HIDDEN * OUT_FEATURES),
        transcendentals=0,
        bytes_accessed=(b_pad * IN_FEATURES * x_itm            # x (source dtype)
                        + IN_FEATURES * HIDDEN * w_itm         # w1
                        + HIDDEN * OUT_FEATURES * w_itm        # w2
                        + HIDDEN * 4 + OUT_FEATURES * 4        # biases
                        + b_pad * OUT_FEATURES * 4),           # narrow f32 output
    )

    logits_pad = pl.pallas_call(
        _mlp_kernel,
        out_shape=jax.ShapeDtypeStruct((b_pad, OUT_FEATURES), jnp.float32),
        grid_spec=pltpu.PrefetchScalarGridSpec(
            num_scalar_prefetch=0,
            grid=(n_steps,),
            in_specs=[
                pl.BlockSpec((tb, IN_FEATURES), lambda i: (i, 0)),       # x tile (unpadded K)
                pl.BlockSpec((IN_FEATURES, HIDDEN), lambda i: (0, 0)),   # w1 resident
                pl.BlockSpec((1, HIDDEN), lambda i: (0, 0)),             # b1 resident
                pl.BlockSpec((HIDDEN, OUT_FEATURES), lambda i: (0, 0)),  # w2 resident
                pl.BlockSpec((1, OUT_FEATURES), lambda i: (0, 0)),       # b2 resident
            ],
            out_specs=pl.BlockSpec((tb, OUT_FEATURES), lambda i: (i, 0)),
        ),
        compiler_params=pltpu.CompilerParams(
            dimension_semantics=("parallel",),          # shard batch steps across TCs
        ),
        cost_estimate=cost,
    )(x2d, w1c, b1r, w2c, b2r)

    return logits_pad[:B] if b_pad != B else logits_pad


def init_params(key):
    """Deterministic init matching nn.Linear default (uniform +/- 1/sqrt(fan_in))."""
    k1, k2, k3, k4 = jax.random.split(key, 4)
    lim1 = 1.0 / jnp.sqrt(jnp.float32(IN_FEATURES))
    lim2 = 1.0 / jnp.sqrt(jnp.float32(HIDDEN))
    # Stored as (in, out) so the kernel does x @ W; equivalent to PyTorch's W^T.
    w1 = jax.random.uniform(k1, (IN_FEATURES, HIDDEN), jnp.float32, -lim1, lim1)
    b1 = jax.random.uniform(k2, (HIDDEN,), jnp.float32, -lim1, lim1)
    w2 = jax.random.uniform(k3, (HIDDEN, OUT_FEATURES), jnp.float32, -lim2, lim2)
    b2 = jax.random.uniform(k4, (OUT_FEATURES,), jnp.float32, -lim2, lim2)
    return w1, b1, w2, b2


if __name__ == "__main__":
    key = jax.random.PRNGKey(0)
    k_x, k_p = jax.random.split(key)

    B = 8
    x = jax.random.normal(k_x, (B, 1, 28, 28), jnp.float32)   # NCHW, like FashionMNIST
    w1, b1, w2, b2 = init_params(k_p)

    logits = fashion_mlp_forward(x, w1, b1, w2, b2)
    jax.block_until_ready(logits)
    assert logits.shape == (B, OUT_FEATURES)

    # Reference with the same bf16-operand / f32-accumulate precision path.
    x2d = x.reshape(B, IN_FEATURES)
    xb, w1b, w2b = (a.astype(jnp.bfloat16) for a in (x2d, w1, w2))
    h_ref = jnp.maximum(
        jnp.dot(xb, w1b, preferred_element_type=jnp.float32) + b1, 0.0)
    ref = jnp.dot(h_ref.astype(jnp.bfloat16), w2b,
                  preferred_element_type=jnp.float32) + b2
    assert jnp.allclose(logits, ref, atol=2e-3, rtol=2e-3)

    # Loose sanity check vs. full-f32 math (bf16 operand quantization only).
    ref_f32 = jnp.maximum(x2d @ w1 + b1, 0.0) @ w2 + b2
    assert jnp.allclose(logits, ref_f32, atol=5e-2, rtol=5e-2)

    print("KERNEL_OK")
</pallas_src>

<mosaic_0001>
module attributes {stable_mosaic.version = 11 : i64} {
  func.func @_mlp_kernel(%arg0: i32, %arg1: memref<16x784xf32, #tpu.memory_space<vmem>>, %arg2: memref<784x128xbf16, #tpu.memory_space<vmem>>, %arg3: memref<1x128xf32, #tpu.memory_space<vmem>>, %arg4: memref<128x10xbf16, #tpu.memory_space<vmem>>, %arg5: memref<1x10xf32, #tpu.memory_space<vmem>>, %arg6: memref<16x10xf32, #tpu.memory_space<vmem>>) attributes {dimension_semantics = [#tpu.dimension_semantics<parallel>], iteration_bounds = array<i64: 1>, scalar_prefetch = 0 : i64, scratch_operands = 0 : i64, tpu.core_type = #tpu.core_type<tc>, window_params = [{transform_indices = @transform_0, window_bounds = array<i64: 16, 784>}, {pipeline_mode = #tpu.pipeline_mode<synchronous>, transform_indices = @transform_1, window_bounds = array<i64: 784, 128>}, {pipeline_mode = #tpu.pipeline_mode<synchronous>, transform_indices = @transform_2, window_bounds = array<i64: 1, 128>}, {pipeline_mode = #tpu.pipeline_mode<synchronous>, transform_indices = @transform_3, window_bounds = array<i64: 128, 10>}, {pipeline_mode = #tpu.pipeline_mode<synchronous>, transform_indices = @transform_4, window_bounds = array<i64: 1, 10>}, {transform_indices = @transform_5, window_bounds = array<i64: 16, 10>}]} {
    %c0 = arith.constant 0 : index
    %c0_0 = arith.constant 0 : index
    %0 = vector.load %arg1[%c0, %c0_0] : memref<16x784xf32, #tpu.memory_space<vmem>>, vector<16x784xf32>
    %1 = arith.truncf %0 : vector<16x784xf32> to vector<16x784xbf16>
    %c0_1 = arith.constant 0 : index
    %c0_2 = arith.constant 0 : index
    %2 = vector.load %arg2[%c0_1, %c0_2] : memref<784x128xbf16, #tpu.memory_space<vmem>>, vector<784x128xbf16>
    %cst = arith.constant dense<0.000000e+00> : vector<16x128xf32>
    %3 = tpu.matmul %1, %2, %cst {dimension_numbers = #tpu.dot_dimension_numbers<[1], [0], [0], [1], [0, 0, 1, 1], [], []>} : vector<16x784xbf16>, vector<784x128xbf16>, vector<16x128xf32> -> vector<16x128xf32>
    %c0_3 = arith.constant 0 : index
    %c0_4 = arith.constant 0 : index
    %4 = vector.load %arg3[%c0_3, %c0_4] : memref<1x128xf32, #tpu.memory_space<vmem>>, vector<1x128xf32>
    %5 = vector.broadcast %4 : vector<1x128xf32> to vector<16x128xf32>
    %6 = arith.addf %3, %5 : vector<16x128xf32>
    %cst_5 = arith.constant 0.000000e+00 : f32
    %7 = vector.broadcast %cst_5 : f32 to vector<16x128xf32>
    %8 = arith.maximumf %6, %7 : vector<16x128xf32>
    %9 = arith.truncf %8 : vector<16x128xf32> to vector<16x128xbf16>
    %c0_6 = arith.constant 0 : index
    %c0_7 = arith.constant 0 : index
    %10 = vector.load %arg4[%c0_6, %c0_7] : memref<128x10xbf16, #tpu.memory_space<vmem>>, vector<128x10xbf16>
    %cst_8 = arith.constant dense<0.000000e+00> : vector<16x10xf32>
    %11 = tpu.matmul %9, %10, %cst_8 {dimension_numbers = #tpu.dot_dimension_numbers<[1], [0], [0], [1], [0, 0, 1, 1], [], []>} : vector<16x128xbf16>, vector<128x10xbf16>, vector<16x10xf32> -> vector<16x10xf32>
    %c0_9 = arith.constant 0 : index
    %c0_10 = arith.constant 0 : index
    %12 = vector.load %arg5[%c0_9, %c0_10] : memref<1x10xf32, #tpu.memory_space<vmem>>, vector<1x10xf32>
    %13 = vector.broadcast %12 : vector<1x10xf32> to vector<16x10xf32>
    %14 = arith.addf %11, %13 : vector<16x10xf32>
    %c0_11 = arith.constant 0 : index
    %c0_12 = arith.constant 0 : index
    %15 = vector.load %arg6[%c0_11, %c0_12] : memref<16x10xf32, #tpu.memory_space<vmem>>, vector<16x10xf32>
    tpu.vector_store %arg6[%c0_11, %c0_12], %14 {strides = array<i32>} : memref<16x10xf32, #tpu.memory_space<vmem>>, vector<16x10xf32>,
    return
  }
  func.func @transform_0(%arg0: i32) -> (i32, i32) {
    %c0_i32 = arith.constant 0 : i32
    %c0_i32_0 = arith.constant 0 : i32
    return %arg0, %c0_i32 : i32, i32
  }
  func.func @transform_1(%arg0: i32) -> (i32, i32) {
    %c0_i32 = arith.constant 0 : i32
    %c0_i32_0 = arith.constant 0 : i32
    %c0_i32_1 = arith.constant 0 : i32
    return %c0_i32, %c0_i32_0 : i32, i32
  }
  func.func @transform_2(%arg0: i32) -> (i32, i32) {
    %c0_i32 = arith.constant 0 : i32
    %c0_i32_0 = arith.constant 0 : i32
    %c0_i32_1 = arith.constant 0 : i32
    return %c0_i32, %c0_i32_0 : i32, i32
  }
  func.func @transform_3(%arg0: i32) -> (i32, i32) {
    %c0_i32 = arith.constant 0 : i32
    %c0_i32_0 = arith.constant 0 : i32
    %c0_i32_1 = arith.constant 0 : i32
    return %c0_i32, %c0_i32_0 : i32, i32
  }
  func.func @transform_4(%arg0: i32) -> (i32, i32) {
    %c0_i32 = arith.constant 0 : i32
    %c0_i32_0 = arith.constant 0 : i32
    %c0_i32_1 = arith.constant 0 : i32
    return %c0_i32, %c0_i32_0 : i32, i32
  }
  func.func @transform_5(%arg0: i32) -> (i32, i32) {
    %c0_i32 = arith.constant 0 : i32
    %c0_i32_0 = arith.constant 0 : i32
    return %arg0, %c0_i32 : i32, i32
  }
}

</mosaic_0001>

<bundles_post_ra>
// kernel: tpu_custom_call.1
= control target key start
LH: loop header
LB: loop body
LE: loop exit
PB: predicated region body
PF: predicated region fallthrough
CT: control target
= control target key end

     0   :  { %10 = vsyncpa [#allocation3], 0  ;;  %s1164_s0 = inlined_call_operand.hbm [shape: f32[16,784], index: 0, kind: input, shape index: {}]   ;;  %s1165_s1 = inlined_call_operand.hbm [shape: bf16[784,128], index: 1, kind: input, shape index: {}]   ;;  %s1166_s2 = inlined_call_operand.vmem [shape: f32[1,128], index: 2, kind: input, shape index: {}]   ;;  %s1167_s3 = inlined_call_operand.vmem [shape: bf16[128,10], index: 3, kind: input, shape index: {}]   ;;  %s1168_s4 = inlined_call_operand.vmem [shape: f32[1,10], index: 4, kind: input, shape index: {}]   ;;  %s1169_s5 = inlined_call_operand.hbm [shape: f32[16,10], index: 5, kind: output, shape index: {}]  }
   0x1   :  { %11 = vsyncpa [#allocation6], 0 }
   0x2   :  { %12 = vsyncpa [#allocation4], 0  ;;  %s1071_s18 = smov [#allocation2]  }
   0x3   :  { %s18_s19 = sshll.u32 %s1071_s18, 4  ;;  %s19_s19 = int_to_ptr.vmem [resolvable:$true] %s18_s19 }
   0x4   :  { %s1013_s20 = scalar_lea.vmem %s19_s19, 1792  ;;  %p1018_p1 = scmp.lt.s32.totalorder %s19_s19, %s19_s19 }
   0x5   :  { %p1014_p0 = scmp.ne.s32.totalorder %s19_s19, %s1013_s20  ;;  %p1019_p2 = scmp.lt.s32.totalorder %s1013_s20, %s1013_s20 }
   0x7   :  { %p1020_p3 = por %p1019_p2, %p1018_p1 }
   0x9   :  { %p1021_p4 = pnand %p1020_p3, %p1014_p0 }
   0xb   :  { %1024 = shalt.err (!%p1021_p4)
}
   0xc   :  { %s1072_s21 = smov 896   ;;  %s1073_s22 = smov 56  }
   0xd   :  { %24 = dma.hbm_to_vmem [thread:$0]  %s1164_s0, 1792, %s19_s19, [#allocation3], %s1072_s21, %s1072_s21, %s1073_s22  }
   0xe   :  { %s1074_s25 = smov [#allocation5]  }
   0xf   :  { %s30_s26 = sshll.u32 %s1074_s25, 4  ;;  %s31_s26 = int_to_ptr.vmem [resolvable:$true] %s30_s26 }
  0x10   :  { %s1033_s27 = scalar_lea.vmem %s31_s26, 6272  ;;  %p1038_p6 = scmp.lt.s32.totalorder %s31_s26, %s31_s26 }
  0x11   :  { %p1034_p5 = scmp.ne.s32.totalorder %s31_s26, %s1033_s27  ;;  %p1039_p7 = scmp.lt.s32.totalorder %s1033_s27, %s1033_s27 }
  0x13   :  { %p1040_p8 = por %p1039_p7, %p1038_p6 }
  0x15   :  { %p1041_p9 = pnand %p1040_p8, %p1034_p5 }
  0x17   :  { %1044 = shalt.err (!%p1041_p9)
}
  0x18   :  { %s1075_s28 = smov 64   ;;  %s1076_s29 = smov 4  }
  0x19   :  { %36 = dma.hbm_to_vmem [thread:$0]  %s1165_s1, 6272, %s31_s26, [#allocation6], %s1075_s28, %s1075_s28, %s1076_s29  }
  0x1a   :  { %1065 = dma.done.wait [#allocation3], 1792  }
  0x1b   :  { %1066 = vsyncadd [#allocation3], 4294965504 }
  0x1c   :  { %1067 = dma.done.wait [#allocation6], 6272  }
  0x1d   :  { %1068 = vsyncadd [#allocation6], 4294961024  ;;  %v948_v0 = vld [vmem:[#allocation5 + $0x78] sm:$0xff]   ;;  %v952_v4 = vld [vmem:[#allocation5 + $0x70] sm:$0xff]   ;;  %v1077_v43 = vmov 0.0   ;;  %vm1078_vm0 = vmmov 0  }
  0x1e   :  { %v949_v1 = vld [vmem:[#allocation5 + $0x38] sm:$0xff]   ;;  %834 = vmatprep.subr.bf16.mxu0 %v948_v0  ;;  %v953_v5 = vld [vmem:[#allocation5 + $0x30] sm:$0xff]   ;;  %v956_v8 = vld [vmem:[#allocation5 + $0x68] sm:$0xff]   ;;  %vm470_vm1 = vcmask 130048   ;;  %vm753_vm2 = vcmask 80896   ;;  %s1079_s23 = smov [#allocation7]  }
  0x1f   :  { %v950_v2 = vld [vmem:[#allocation5 + $0xf8] sm:$0xff]   ;;  %835 = vmatpush3.bf16.msra.mxu0 %v949_v1  ;;  %v954_v6 = vld [vmem:[#allocation5 + $0xf0] sm:$0xff]   ;;  %v957_v9 = vld [vmem:[#allocation5 + $0x28] sm:$0xff]   ;;  %s761_s24 = sshll.u32 %s1079_s23, 4  ;;  %s762_s24 = int_to_ptr.vmem [resolvable:$true] %s761_s24 }
  0x20   :  { %v951_v3 = vld [vmem:[#allocation5 + $0xb8] sm:$0xff]   ;;  %856 = vmatprep.subr.bf16.mxu1 %v950_v2  ;;  %836 = vmatprep.subr.bf16.mxu0 %v952_v4  ;;  %v955_v7 = vld [vmem:[#allocation5 + $0xb0] sm:$0xff]   ;;  %v958_v10 = vld [vmem:[#allocation5 + $0xe8] sm:$0xff]   ;;  %s1045_s25 = scalar_lea.vmem %s762_s24, 256  ;;  %p1050_p11 = scmp.lt.s32.totalorder %s762_s24, %s762_s24 }
  0x21   :  { %857 = vmatpush3.bf16.msra.mxu1 %v951_v3  ;;  %v959_v11 = vld [vmem:[#allocation5 + $0xa8] sm:$0xff]   ;;  %v960_v12 = vld [vmem:[#allocation5 + $0x60] sm:$0xff]   ;;  %v964_v16 = vld [vmem:[#allocation5 + $0x58] sm:$0xff]   ;;  %p1046_p10 = scmp.ne.s32.totalorder %s762_s24, %s1045_s25  ;;  %p1051_p12 = scmp.lt.s32.totalorder %s1045_s25, %s1045_s25 }
  0x22   :  { %858 = vmatprep.subr.bf16.mxu1 %v954_v6  ;;  %v961_v13 = vld [vmem:[#allocation5 + $0x20] sm:$0xff]   ;;  %v965_v17 = vld [vmem:[#allocation5 + $0x18] sm:$0xff]   ;;  %v968_v20 = vld [vmem:[#allocation5 + $0x50] sm:$0xff]  }
  0x23   :  { %837 = vmatpush3.bf16.msra.mxu0 %v953_v5  ;;  %v962_v14 = vld [vmem:[#allocation5 + $0xe0] sm:$0xff]   ;;  %v966_v18 = vld [vmem:[#allocation5 + $0xd8] sm:$0xff]   ;;  %v969_v21 = vld [vmem:[#allocation5 + $0x10] sm:$0xff]   ;;  %p1052_p13 = por %p1051_p12, %p1050_p11 }
  0x24   :  { %838 = vmatprep.subr.bf16.mxu0 %v956_v8  ;;  %v963_v15 = vld [vmem:[#allocation5 + $0xa0] sm:$0xff]   ;;  %v967_v19 = vld [vmem:[#allocation5 + $0x98] sm:$0xff]   ;;  %v970_v22 = vld [vmem:[#allocation5 + $0xd0] sm:$0xff]  }
  0x25   :  { %859 = vmatpush3.bf16.msra.mxu1 %v955_v7  ;;  %v971_v23 = vld [vmem:[#allocation5 + $0x90] sm:$0xff]   ;;  %v972_v24 = vld [vmem:[#allocation5 + $0x48] sm:$0xff]   ;;  %v976_v28 = vld [vmem:[#allocation5 + $0x40] sm:$0xff]   ;;  %p1053_p0 = pnand %p1052_p13, %p1046_p10 }
  0x26   :  { %860 = vmatprep.subr.bf16.mxu1 %v958_v10  ;;  %v973_v25 = vld [vmem:[#allocation5 + $0x8] sm:$0xff]   ;;  %v977_v29 = vld [vmem:[#allocation5] sm:$0xff]   ;;  %v51_v31 = vld [vmem:[#allocation2 + $0x8] sm:$0xff] }
  0x27   :  { %839 = vmatpush3.bf16.msra.mxu0 %v957_v9  ;;  %v974_v26 = vld [vmem:[#allocation5 + $0xc8] sm:$0xff]   ;;  %v978_v30 = vld [vmem:[#allocation5 + $0xc0] sm:$0xff]   ;;  %v58_v32 = vld [vmem:[#allocation2 + $0x40] sm:$0xff] }
  0x28   :  { %840 = vmatprep.subr.bf16.mxu0 %v960_v12  ;;  %v975_v27 = vld [vmem:[#allocation5 + $0x88] sm:$0xff]   ;;  %v65_v33 = vpack.c.bf16 %v58_v32, %v51_v31  ;;  %v979_v34 = vld [vmem:[#allocation5 + $0x80] sm:$0xff]   ;;  %v50_v35 = vld [vmem:[#allocation2] sm:$0xff] }
  0x29   :  { %861 = vmatpush3.bf16.msra.mxu1 %v959_v11  ;;  %v57_v36 = vld [vmem:[#allocation2 + $0x38] sm:$0xff]  ;;  %v980_v38 = vld [vmem:[#allocation5 + $0x178] sm:$0xff]   ;;  %v60_v40 = vld [vmem:[#allocation2 + $0x50] sm:$0xff] }
  0x2a   :  { %862 = vmatprep.subr.bf16.mxu1 %v962_v14  ;;  %506 = vmatprep.mubr.bf16.mxu0 %v65_v33  ;;  %v64_v37 = vpack.c.bf16 %v57_v36, %v50_v35  ;;  %v53_v39 = vld [vmem:[#allocation2 + $0x18] sm:$0xff]  ;;  %v981_v42 = vld [vmem:[#allocation5 + $0x138] sm:$0xff]   ;;  %v52_v44 = vld [vmem:[#allocation2 + $0x10] sm:$0xff] }
  0x2b   :  { %841 = vmatpush3.bf16.msra.mxu0 %v961_v13  ;;  %v67_v41 = vpack.c.bf16 %v60_v40, %v53_v39  ;;  %v59_v45 = vld [vmem:[#allocation2 + $0x48] sm:$0xff]  ;;  %v982_v47 = vld [vmem:[#allocation5 + $0x170] sm:$0xff]   ;;  %v984_v49 = vld [vmem:[#allocation5 + $0x168] sm:$0xff]  }
  0x2c   :  { %842 = vmatprep.subr.bf16.mxu0 %v964_v16  ;;  %v66_v46 = vpack.c.bf16 %v59_v45, %v52_v44  ;;  %v983_v48 = vld [vmem:[#allocation5 + $0x130] sm:$0xff]   ;;  %v985_v50 = vld [vmem:[#allocation5 + $0x128] sm:$0xff]   ;;  %v986_v51 = vld [vmem:[#allocation5 + $0x160] sm:$0xff]  }
  0x2d   :  { %863 = vmatpush3.bf16.msra.mxu1 %v963_v15  ;;  %547 = vmatprep.mubr.bf16.mxu1 %v67_v41  ;;  %v987_v52 = vld [vmem:[#allocation5 + $0x120] sm:$0xff]   ;;  %v988_v53 = vld [vmem:[#allocation5 + $0x158] sm:$0xff]   ;;  %v990_v55 = vld [vmem:[#allocation5 + $0x150] sm:$0xff]  }
  0x2e   :  { %864 = vmatprep.subr.bf16.mxu1 %v966_v18  ;;  %v989_v54 = vld [vmem:[#allocation5 + $0x118] sm:$0xff]   ;;  %v996_v56 = vld [vmem:[#allocation5 + $0x180] sm:$0xff]   ;;  %v991_v58 = vld [vmem:[#allocation5 + $0x110] sm:$0xff]  }
  0x2f   :  { %843 = vmatpush3.bf16.msra.mxu0 %v965_v17  ;;  %v55_v57 = vld [vmem:[#allocation2 + $0x28] sm:$0xff]  ;;  %v992_v59 = vld [vmem:[#allocation5 + $0x148] sm:$0xff]   ;;  %v62_v60 = vld [vmem:[#allocation2 + $0x60] sm:$0xff] }
  0x30   :  { %844 = vmatprep.subr.bf16.mxu0 %v968_v20  ;;  %v69_v61 = vpack.c.bf16 %v62_v60, %v55_v57  ;;  %v56_v62 = vld [vmem:[#allocation2 + $0x30] sm:$0xff]  ;;  %v63_v63 = vld [vmem:[#allocation2 + $0x68] sm:$0xff]  ;;  %v993_v1 = vld [vmem:[#allocation5 + $0x108] sm:$0xff]  }
  0x31   :  { %865 = vmatpush3.bf16.msra.mxu1 %v967_v19  ;;  %v70_v0 = vpack.c.bf16 %v63_v63, %v56_v62  ;;  %v994_v2 = vld [vmem:[#allocation5 + $0x140] sm:$0xff]   ;;  %v54_v4 = vld [vmem:[#allocation2 + $0x20] sm:$0xff]  ;;  %v61_v5 = vld [vmem:[#allocation2 + $0x58] sm:$0xff] }
  0x32   :  { %866 = vmatprep.subr.bf16.mxu1 %v970_v22  ;;  %v995_v3 = vld [vmem:[#allocation5 + $0x100] sm:$0xff]   ;;  %v68_v6 = vpack.c.bf16 %v61_v5, %v54_v4  ;;  %v997_v7 = vld [vmem:[%s1167_s3 + $0x38] sm:$0xff]   ;;  %v999_v9 = vld [vmem:[%s1167_s3 + $0x28] sm:$0xff]  }
  0x33   :  { %845 = vmatpush3.bf16.msra.mxu0 %v969_v21  ;;  %v998_v8 = vld [vmem:[%s1167_s3 + $0x30] sm:$0xff]   ;;  %v1000_v10 = vld [vmem:[%s1167_s3 + $0x20] sm:$0xff]   ;;  %v1001_v11 = vld [vmem:[%s1167_s3 + $0x18] sm:$0xff]  }
  0x34   :  { %846 = vmatprep.subr.bf16.mxu0 %v972_v24  ;;  %v1002_v12 = vld [vmem:[%s1167_s3 + $0x10] sm:$0xff]   ;;  %v1003_v13 = vld [vmem:[%s1167_s3 + $0x8] sm:$0xff]   ;;  %v1004_v14 = vld [vmem:[%s1167_s3] sm:$0xff]  }
  0x35   :  { %867 = vmatpush3.bf16.msra.mxu1 %v971_v23 }
  0x36   :  { %868 = vmatprep.subr.bf16.mxu1 %v974_v26 }
  0x37   :  { %847 = vmatpush3.bf16.msra.mxu0 %v973_v25 }
  0x38   :  { %848 = vmatprep.subr.bf16.mxu0 %v976_v28 }
  0x39   :  { %869 = vmatpush3.bf16.msra.mxu1 %v975_v27  ;;  %v774_v27 = vld [vmem:[%s1166_s2] ss:$0 sm:$0xff] }
  0x3a   :  { %870 = vmatprep.subr.bf16.mxu1 %v978_v30 }
  0x3b   :  { %849 = vmatpush3.bf16.msra.mxu0 %v977_v29 }
  0x3c   :  { %878 = vmatprep.subr.bf16.mxu0 %v980_v38 }
  0x3d   :  { %871 = vmatpush3.bf16.msra.mxu1 %v979_v34 }
  0x3e   :  { %911 = vmatprep.subr.bf16.mxu1 %v1077_v43  ;;  %507 = vmatmul.mubr.bf16.vlgmr.msra.gmra.mxu0 %v64_v37 }
  0x3f   :  { %879 = vmatpush3.bf16.msra.mxu0 %v981_v42  ;;  %588 = vmatprep.mubr.bf16.mxu0 %v69_v61 }
  0x40   :  { %548 = vmatmul.mubr.bf16.vlgmr.msra.gmra.mxu1 %v66_v46  ;;  %880 = vmatprep.subr.bf16.mxu0 %v982_v47 }
  0x41   :  { %913 = vmatprep.mubr.msk.bf16.mxu1 %vm1078_vm0, %v1077_v43  ;;  %912 = vmatpush3.bf16.msra.mxu1 %v996_v56 }
  0x42   :  { %917 = vmatprep.subr.bf16.mxu1 %v1077_v43 }
  0x43   :  { %881 = vmatpush3.bf16.msra.mxu0 %v983_v48 }
  0x44   :  { %882 = vmatprep.subr.bf16.mxu0 %v984_v49  ;;  %v825_v49 = vld [vmem:[%s1168_s4] ss:$0 sm:$0xff] }
  0x47   :  { %883 = vmatpush3.bf16.msra.mxu0 %v985_v50 }
  0x48   :  { %884 = vmatprep.subr.bf16.mxu0 %v986_v51  ;;  %914 = vmatmul.mubr.msk.bf16.vlgmr.msra.gmra.mxu1 %vm470_vm1, %v70_v0 }
  0x49   :  { %933 = vmatprep.mubr.msk.bf16.mxu1 %vm1078_vm0, %v1077_v43  ;;  %918 = vmatpush3.bf16.msra.mxu1 %v997_v7 }
  0x4a   :  { %919 = vmatprep.subr.bf16.mxu1 %v1077_v43 }
  0x4b   :  { %885 = vmatpush3.bf16.msra.mxu0 %v987_v52 }
  0x4c   :  { %886 = vmatprep.subr.bf16.mxu0 %v988_v53 }
  0x4d   :  { %920 = vmatpush3.bf16.msra.mxu1 %v998_v8 }
  0x4e   :  { %921 = vmatprep.subr.bf16.mxu1 %v1077_v43 }
  0x4f   :  { %887 = vmatpush3.bf16.msra.mxu0 %v989_v54 }
  0x50   :  { %888 = vmatprep.subr.bf16.mxu0 %v990_v55 }
  0x51   :  { %922 = vmatpush3.bf16.msra.mxu1 %v999_v9 }
  0x52   :  { %923 = vmatprep.subr.bf16.mxu1 %v1077_v43 }
  0x53   :  { %889 = vmatpush3.bf16.msra.mxu0 %v991_v58 }
  0x54   :  { %890 = vmatprep.subr.bf16.mxu0 %v992_v59 }
  0x55   :  { %924 = vmatpush3.bf16.msra.mxu1 %v1000_v10 }
  0x56   :  { %925 = vmatprep.subr.bf16.mxu1 %v1077_v43 }
  0x57   :  { %891 = vmatpush3.bf16.msra.mxu0 %v993_v1 }
  0x58   :  { %892 = vmatprep.subr.bf16.mxu0 %v994_v2 }
  0x59   :  { %926 = vmatpush3.bf16.msra.mxu1 %v1001_v11 }
  0x5a   :  { %927 = vmatprep.subr.bf16.mxu1 %v1077_v43 }
  0x5b   :  { %893 = vmatpush3.bf16.msra.mxu0 %v995_v3 }
  0x5d   :  { %928 = vmatpush3.bf16.msra.mxu1 %v1002_v12 }
  0x5e   :  { %589 = vmatmul.mubr.bf16.vlgmr.msra.gmra.mxu0 %v68_v6  ;;  %929 = vmatprep.subr.bf16.mxu1 %v1077_v43 }
  0x61   :  { %930 = vmatpush3.bf16.msra.mxu1 %v1003_v13 }
  0x62   :  { %931 = vmatprep.subr.bf16.mxu1 %v1077_v43 }
  0x65   :  { %932 = vmatpush3.bf16.msra.mxu1 %v1004_v14 }
  0xfe   :  { %v850_v18 = vpop.f32.mrf.mxu0 }
 0x100   :  { %v872_v15 = vpop.f32.mrf.mxu1  ;;  %v851_v20 = vpop.f32.mrf.mxu0 }
 0x101   :  { %v852_v26 = vadd.f32 %v851_v20, %v850_v18 }
 0x102   :  { %v873_v16 = vpop.f32.mrf.mxu1  ;;  %v853_v23 = vpop.f32.mrf.mxu0 }
 0x103   :  { %v509_v29 = vadd.f32 %v852_v26, %v774_v27  ;;  %v874_v30 = vadd.f32 %v873_v16, %v872_v15 }
 0x104   :  { %v875_v17 = vpop.f32.mrf.mxu1  ;;  %v854_v28 = vpop.f32.mrf.mxu0 }
 0x105   :  { %v855_v31 = vadd.f32 %v854_v28, %v853_v23  ;;  %v550_v34 = vadd.f32 %v874_v30, %v509_v29 }
 0x106   :  { %v876_v19 = vpop.f32.mrf.mxu1 }
 0x107   :  { %v512_v35 = vadd.f32 %v855_v31, %v774_v27  ;;  %v877_v36 = vadd.f32 %v876_v19, %v875_v17 }
 0x108   :  { %v631_v21 = vpop.f32.mrf.mxu1 }
 0x109   :  { %v553_v41 = vadd.f32 %v877_v36, %v512_v35 }
 0x10a   :  { %v915_v22 = vpop.f32.mrf.mxu1 }
 0x10c   :  { %v634_v24 = vpop.f32.mrf.mxu1 }
 0x10e   :  { %v916_v25 = vpop.f32.mrf.mxu1 }
 0x11e   :  { %v894_v32 = vpop.f32.mrf.mxu0 }
 0x120   :  { %v895_v33 = vpop.f32.mrf.mxu0 }
 0x121   :  { %v896_v37 = vadd.f32 %v895_v33, %v894_v32 }
 0x122   :  { %v897_v38 = vpop.f32.mrf.mxu0 }
 0x123   :  { %v591_v39 = vadd.f32 %v896_v37, %v550_v34 }
 0x124   :  { %v898_v40 = vpop.f32.mrf.mxu0 }
 0x125   :  { %v899_v42 = vadd.f32 %v898_v40, %v897_v38  ;;  %v632_v43 = vadd.f32 %v631_v21, %v591_v39 }
 0x127   :  { %v594_v44 = vadd.f32 %v899_v42, %v553_v41  ;;  %v638_v46 = vmax.f32 %v632_v43, 0.0 }
 0x129   :  { %v635_v45 = vadd.f32 %v634_v24, %v594_v44 }
 0x12b   :  { %v639_v47 = vmax.f32 %v635_v45, 0.0 }
 0x12d   :  { %v640_v48 = vpack.c.bf16 %v639_v47, %v638_v46 }
 0x12f   :  { %934 = vmatmul.mubr.bf16.vlgmr.msra.gmra.mxu1 %v640_v48 }
 0x1ef   :  { %v746_v50 = vpop.f32.mrf.mxu1 }
 0x1f0   :  { %v747_v51 = vadd.f32 %v825_v49, %v746_v50 }
 0x1f1   :  { %v935_v52 = vpop.f32.mrf.mxu1 }
 0x1f2   :  { %754 = vst.msk [vmem:[#allocation7] sm:$0xff] %vm753_vm2, %v747_v51 }
 0x1f3   :  { %v749_v53 = vpop.f32.mrf.mxu1 }
 0x1f4   :  { %v750_v54 = vadd.f32 %v825_v49, %v749_v53 }
 0x1f5   :  { %v936_v55 = vpop.f32.mrf.mxu1 }
 0x1f6   :  { %755 = vst.msk [vmem:[#allocation7 + $0x8] sm:$0xff] %vm753_vm2, %v750_v54 }
 0x1f7   :  { %1056 = shalt.err (!%p1053_p0)
}
 0x1f8   :  { %s1080_s4 = smov 128   ;;  %s1081_s26 = smov 8  }
 0x1f9   :  { %767 = dma.vmem_to_hbm [thread:$0]  %s762_s24, 256, %s1169_s5, [#allocation4], %s1080_s4, %s1080_s4, %s1081_s26  }
 0x1fa   :  { %1069 = dma.done.wait [#allocation4], 256  }
 0x1fb   :  { %1070 = vsyncadd [#allocation4], 4294967040 }
 0x1fc   :  { %771 = vsyncpa [#allocation3], 1 }
 0x1fd   :  { %772 = vsyncpa [#allocation6], 1 }
 0x1fe   :  { %773 = vsyncpa [#allocation4], 1 }

</bundles_post_ra>
